<compile_context>
chip_gen: v5e
topology: v5e:2x2
jax: 0.10.0
libtpu: 0.0.40
codegen_flags: <defaults>
</compile_context>

<pallas_src>
import functools

import jax
import jax.numpy as jnp
from jax.experimental import pallas as pl
from jax.experimental.pallas import tpu as pltpu


def _l2_reg_kernel(x_ref, o_ref, *, lmbda):
    # x_ref / o_ref: (rt, lane) lane-dense tiles of the flattened input.
    x = x_ref[...]
    # Compute in the native dtype (matches torch MSELoss behavior on bf16/fp16).
    o_ref[...] = (x * x * jnp.asarray(lmbda, dtype=x.dtype)).astype(o_ref.dtype)


def _pick_lane(n):
    """Largest lane width in {512, 256, 128} dividing n; else pad to 128."""
    for lane in (512, 256, 128):
        if n % lane == 0:
            return lane, 0
    lane = 128
    pad = (-n) % lane
    return lane, pad


def l2_reg_loss(inpt, lmbda=1.0, *, target_block_bytes=4 << 20):
    """Pallas TPU implementation of L2RegLoss.forward.

    Returns lmbda * inpt**2 with the same shape and dtype as `inpt`.
    """
    orig_shape = inpt.shape
    dtype = inpt.dtype
    itemsize = jnp.dtype(dtype).itemsize
    n = 1
    for s in orig_shape:
        n *= s
    if n == 0:
        return jnp.zeros(orig_shape, dtype)

    # Lane width: pick a divisor of n so no padding / slice-back is needed.
    lane, pad = _pick_lane(n)

    flat = inpt.reshape(-1)
    if pad:
        # Rare path (n % 128 != 0): small zero pad; zeros square to zeros and
        # the tail is sliced off below.
        flat = jnp.pad(flat, (0, pad))
    n_padded = n + pad
    rows = n_padded // lane
    x2d = flat.reshape(rows, lane)

    # Sublane granularity: 8 rows for 32-bit, 16 for 16-bit, 32 for 8-bit.
    sub = 16 if itemsize == 2 else (32 if itemsize == 1 else 8)

    # Row tile sized by BYTES: ~target_block_bytes per block, aligned to the
    # sublane count, never larger than the (sub-rounded) input itself.
    rt_budget = max(sub, (target_block_bytes // (lane * itemsize)) // sub * sub)
    rt = min(rt_budget, pl.cdiv(rows, sub) * sub)
    # Megacore balance (v7x): keep >= 4 grid steps for medium-sized inputs so
    # both TensorCores get work on the 'parallel' axis.
    if rows >= 4 * sub:
        rt = min(rt, max(sub, (rows // 4) // sub * sub))
    rt = max(sub, (rt // sub) * sub)

    # Partial last block is handled by Pallas (masked store) -> no row padding.
    num_tiles = pl.cdiv(rows, rt)

    cost = pl.CostEstimate(
        flops=2 * n,                         # square + scale
        transcendentals=0,
        bytes_accessed=2 * n * itemsize,     # read input + write output
    )

    out = pl.pallas_call(
        functools.partial(_l2_reg_kernel, lmbda=float(lmbda)),
        out_shape=jax.ShapeDtypeStruct((rows, lane), dtype),
        grid_spec=pltpu.PrefetchScalarGridSpec(
            num_scalar_prefetch=0,
            grid=(num_tiles,),
            in_specs=[pl.BlockSpec((rt, lane), lambda i: (i, 0))],
            out_specs=pl.BlockSpec((rt, lane), lambda i: (i, 0)),
        ),
        compiler_params=pltpu.CompilerParams(
            dimension_semantics=("parallel",),
            vmem_limit_bytes=32 << 20,   # 2x(in+out) 4 MiB blocks = 16 MiB < 32 MiB
        ),
        cost_estimate=cost,
    )(x2d)

    if pad:
        return out.reshape(-1)[:n].reshape(orig_shape)
    return out.reshape(orig_shape)


if __name__ == "__main__":
    key = jax.random.PRNGKey(0)

    # Small shape consistent with the module: batch=2, seq=8, hidden=32.
    inpt = jax.random.normal(key, (2, 8, 32), dtype=jnp.float32)
    lmbda = 1.0

    loss = l2_reg_loss(inpt, lmbda)
    loss = jax.block_until_ready(loss)

    ref = lmbda * inpt ** 2
    assert loss.shape == ref.shape, (loss.shape, ref.shape)
    assert loss.dtype == ref.dtype, (loss.dtype, ref.dtype)
    assert jnp.allclose(loss, ref, atol=1e-6, rtol=1e-6), "mismatch vs reference (f32)"

    # Ragged row count (partial last block, multiple grid steps) + lmbda != 1.
    k2 = jax.random.PRNGKey(1)
    x2 = jax.random.normal(k2, (4, 50, 32), dtype=jnp.float32)
    y2 = jax.block_until_ready(l2_reg_loss(x2, 0.5))
    assert jnp.allclose(y2, 0.5 * x2 ** 2, atol=1e-6, rtol=1e-6), "mismatch (ragged rows)"

    # Odd total size -> small-pad fallback path.
    k3 = jax.random.PRNGKey(2)
    x3 = jax.random.normal(k3, (3, 5, 7), dtype=jnp.float32)
    y3 = jax.block_until_ready(l2_reg_loss(x3, 2.0))
    assert jnp.allclose(y3, 2.0 * x3 ** 2, atol=1e-6, rtol=1e-6), "mismatch (odd size)"

    # bf16 path (16-row sublane packing, compute in native dtype).
    x4 = inpt.astype(jnp.bfloat16)
    y4 = jax.block_until_ready(l2_reg_loss(x4, 1.0))
    assert y4.dtype == jnp.bfloat16
    assert jnp.allclose(y4.astype(jnp.float32), (x4 * x4).astype(jnp.float32),
                        atol=1e-2, rtol=1e-2), "mismatch (bf16)"

    print("KERNEL_OK")
</pallas_src>

<mosaic_0001>
module attributes {stable_mosaic.version = 11 : i64} {
  func.func @_l2_reg_kernel(%arg0: i32, %arg1: memref<8x512xf32, #tpu.memory_space<vmem>>, %arg2: memref<8x512xf32, #tpu.memory_space<vmem>>) attributes {dimension_semantics = [#tpu.dimension_semantics<parallel>], iteration_bounds = array<i64: 1>, scalar_prefetch = 0 : i64, scratch_operands = 0 : i64, tpu.core_type = #tpu.core_type<tc>, window_params = [{transform_indices = @transform_0, window_bounds = array<i64: 8, 512>}, {transform_indices = @transform_1, window_bounds = array<i64: 8, 512>}]} {
    %c0 = arith.constant 0 : index
    %c0_0 = arith.constant 0 : index
    %0 = vector.load %arg1[%c0, %c0_0] : memref<8x512xf32, #tpu.memory_space<vmem>>, vector<8x512xf32>
    %1 = arith.mulf %0, %0 : vector<8x512xf32>
    %cst = arith.constant 1.000000e+00 : f32
    %2 = vector.broadcast %cst : f32 to vector<8x512xf32>
    %3 = arith.mulf %1, %2 : vector<8x512xf32>
    %c0_1 = arith.constant 0 : index
    %c0_2 = arith.constant 0 : index
    %4 = vector.load %arg2[%c0_1, %c0_2] : memref<8x512xf32, #tpu.memory_space<vmem>>, vector<8x512xf32>
    tpu.vector_store %arg2[%c0_1, %c0_2], %3 {strides = array<i32>} : memref<8x512xf32, #tpu.memory_space<vmem>>, vector<8x512xf32>,
    return
  }
  func.func @transform_0(%arg0: i32) -> (i32, i32) {
    %c0_i32 = arith.constant 0 : i32
    %c0_i32_0 = arith.constant 0 : i32
    return %arg0, %c0_i32 : i32, i32
  }
  func.func @transform_1(%arg0: i32) -> (i32, i32) {
    %c0_i32 = arith.constant 0 : i32
    %c0_i32_0 = arith.constant 0 : i32
    return %arg0, %c0_i32 : i32, i32
  }
}

</mosaic_0001>

<bundles_post_ra>
// kernel: tpu_custom_call.1
= control target key start
LH: loop header
LB: loop body
LE: loop exit
PB: predicated region body
PF: predicated region fallthrough
CT: control target
= control target key end

     0   :  { %6 = vsyncpa [#allocation3], 0  ;;  %s174_s0 = inlined_call_operand.hbm [shape: f32[1,512], index: 0, kind: input, shape index: {}]   ;;  %s175_s1 = inlined_call_operand.hbm [shape: f32[1,512], index: 1, kind: output, shape index: {}]  }
   0x1   :  { %7 = vsyncpa [#allocation4], 0 }
   0x2   :  { %11 = vsyncadd [#allocation3], 448  ;;  %s12_s8 = sshll.u32 %s174_s0, 4  ;;  %s128_s9 = smov [#allocation2]   ;;  %s13_s8 = int_to_ptr.hbm [resolvable:$true] %s12_s8 }
   0x3   :  { %s14_s10 = sshll.u32 %s128_s9, 4  ;;  %s129_s11 = smov 64   ;;  %s15_s10 = int_to_ptr.vmem [resolvable:$true] %s14_s10 }
   0x4   :  { %s130_s12 = smov 4  }
   0x5   :  { %20 = dma.hbm_to_vmem [thread:$0]  %s13_s8, 64, %s15_s10, [#allocation3], %s129_s11, %s129_s11, %s130_s12  }
   0x6   :  { %124 = dma.done.wait [#allocation3], 512  }
   0x7   :  { %125 = vsyncadd [#allocation3], 4294966784  ;;  %v41_v0 = vlaneseq  ;;  %v25_v2 = vld [vmem:[#allocation2] sm:$0xf]  ;;  %v26_v3 = vld [vmem:[#allocation2 + $0x4] sm:$0xf] }
   0x8   :  { %v27_v4 = vld [vmem:[#allocation2 + $0x8] sm:$0xf]  ;;  %v33_v5 = vmul.f32 %v25_v2, %v25_v2  ;;  %v34_v6 = vmul.f32 %v26_v3, %v26_v3  ;;  %v28_v8 = vld [vmem:[#allocation2 + $0xc] sm:$0xf]  ;;  %v29_v9 = vld [vmem:[#allocation2 + $0x10] sm:$0xf] }
   0x9   :  { %vm148_vm0 = vcmp.lt.s32.totalorder %v41_v0, 512  ;;  %v35_v7 = vmul.f32 %v27_v4, %v27_v4  ;;  %v30_v10 = vld [vmem:[#allocation2 + $0x14] sm:$0xf]  ;;  %v36_v11 = vmul.f32 %v28_v8, %v28_v8  ;;  %v31_v12 = vld [vmem:[#allocation2 + $0x18] sm:$0xf]  ;;  %v37_v13 = vmul.f32 %v29_v9, %v29_v9 }
   0xa   :  { %45 = vst.msk [vmem:[#allocation5] sm:$0xf] %vm148_vm0, %v33_v5  ;;  %v32_v14 = vld [vmem:[#allocation2 + $0x1c] sm:$0xf]  ;;  %v38_v15 = vmul.f32 %v30_v10, %v30_v10  ;;  %v39_v16 = vmul.f32 %v31_v12, %v31_v12 }
   0xb   :  { %46 = vst.msk [vmem:[#allocation5 + $0x4] sm:$0xf] %vm148_vm0, %v34_v6  ;;  %v40_v17 = vmul.f32 %v32_v14, %v32_v14 }
   0xc   :  { %47 = vst.msk [vmem:[#allocation5 + $0x8] sm:$0xf] %vm148_vm0, %v35_v7 }
   0xd   :  { %48 = vst.msk [vmem:[#allocation5 + $0xc] sm:$0xf] %vm148_vm0, %v36_v11 }
   0xe   :  { %49 = vst.msk [vmem:[#allocation5 + $0x10] sm:$0xf] %vm148_vm0, %v37_v13 }
   0xf   :  { %50 = vst.msk [vmem:[#allocation5 + $0x14] sm:$0xf] %vm148_vm0, %v38_v15 }
  0x10   :  { %51 = vst.msk [vmem:[#allocation5 + $0x18] sm:$0xf] %vm148_vm0, %v39_v16 }
  0x11   :  { %52 = vst.msk [vmem:[#allocation5 + $0x1c] sm:$0xf] %vm148_vm0, %v40_v17 }
  0x12   :  { %56 = vsyncadd [#allocation4], 448  ;;  %s59_s14 = sshll.u32 %s175_s1, 4  ;;  %s131_s15 = smov [#allocation5]   ;;  %s60_s14 = int_to_ptr.hbm [resolvable:$true] %s59_s14 }
  0x13   :  { %s57_s16 = sshll.u32 %s131_s15, 4  ;;  %s58_s16 = int_to_ptr.vmem [resolvable:$true] %s57_s16 }
  0x14   :  { %65 = dma.vmem_to_hbm [thread:$0]  %s58_s16, 64, %s60_s14, [#allocation4], %s129_s11, %s129_s11, %s130_s12  }
  0x15   :  { %126 = dma.done.wait [#allocation4], 512  }
  0x16   :  { %127 = vsyncadd [#allocation4], 4294966784 }
  0x17   :  { %70 = vsyncpa [#allocation3], 1 }
  0x18   :  { %71 = vsyncpa [#allocation4], 1 }

</bundles_post_ra>
